<compile_context>
chip_gen: v7x
topology: tpu7x:2x2x1
jax: 0.10.0
libtpu: 0.0.40
codegen_flags: <defaults>
</compile_context>

<pallas_src>
import functools

import jax
import jax.numpy as jnp
from jax.experimental import pallas as pl
from jax.experimental.pallas import tpu as pltpu

EPS = 1e-5


# ---------------------------------------------------------------------------
# Kernel
# ---------------------------------------------------------------------------
def _prenorm_linear_kernel(x_ref, w_ref, b_ref, o_ref, y_ref):
    """Fused LayerNorm (last dim) + Linear on one (row-tile, col-tile) block.

    x_ref: (TM, C)   rows of the flattened (M, C) input
    w_ref: (C, TN)   bf16 folded weight column tile  (gamma already folded in)
    b_ref: (1, TN)   f32 folded bias column tile     (beta @ W + b)
    o_ref: (TM, TN)  output tile
    y_ref: (TM, C)   bf16 VMEM scratch caching the normalized rows across j tiles
    """
    # Normalize once per row tile (only on the first column tile), cache in VMEM.
    @pl.when(pl.program_id(1) == 0)
    def _():
        x = x_ref[...].astype(jnp.float32)                   # LN stats in f32
        mean = jnp.mean(x, axis=-1, keepdims=True)
        centered = x - mean
        var = jnp.mean(centered * centered, axis=-1, keepdims=True)
        inv = jax.lax.rsqrt(var + EPS)                        # EUP rsqrt (free slot)
        y_ref[...] = (centered * inv).astype(y_ref.dtype)     # bf16 MXU operand

    # fn := Linear(C -> D): bf16 MXU operands, f32 accumulation.
    out = jnp.dot(y_ref[...], w_ref[...], preferred_element_type=jnp.float32)
    out = out + b_ref[...]
    o_ref[...] = out.astype(o_ref.dtype)


# ---------------------------------------------------------------------------
# Setup-time helpers (run once, NOT per forward call)
# ---------------------------------------------------------------------------
def _round_up(a: int, b: int) -> int:
    return (a + b - 1) // b * b


def _vmem_capacity_bytes() -> int:
    try:
        return int(pltpu.get_tpu_info().vmem_capacity_bytes)
    except Exception:
        return 128 * 1024 * 1024  # v5e/v6e default


def select_tiles(M: int, C: int, D: int, x_itemsize: int, out_itemsize: int):
    """Pick (tile_m, tile_n, vmem_limit_bytes) for the current TPU generation."""
    vmem_cap = _vmem_capacity_bytes()
    small_vmem = vmem_cap <= 64 * 1024 * 1024                # v7x (64 MiB / TC)
    budget = min(vmem_cap // 2, 48 * 1024 * 1024)            # 32 MiB v7x, 48 MiB v5e/v6e

    # N tile: lane-dense, 256-multiple for the 256-wide MXUs when D is large.
    tile_n_max = 512 if small_vmem else 1024
    if D >= 256:
        tile_n = min(tile_n_max, _round_up(D, 256))
    else:
        tile_n = _round_up(max(D, 1), 128)

    # Row tile: ~2 MiB of f32 x per tile (up to 4096 rows for small C).
    rows = (2 * 1024 * 1024) // max(1, 4 * C)
    rows = max(256, min(4096, rows))
    tile_m = _round_up(min(rows, _round_up(M, 8)), 8)

    # Keep both v7x TensorCores busy: at least 2 blocks on the parallel i axis.
    if pl.cdiv(M, tile_m) < 2 and M > 8:
        tile_m = _round_up(pl.cdiv(M, 2), 8)

    # VMEM accounting, including the kernel-internal f32 temporaries.
    def vmem_est(tm, tn):
        return (2 * tm * C * x_itemsize            # x tiles (double-buffered)
                + 2 * tm * tn * out_itemsize       # out tiles (double-buffered)
                + 2 * C * tn * 2 + 2 * tn * 4      # bf16 W tiles + f32 bias tiles
                + tm * C * 2                       # bf16 normalized-y scratch
                + 3 * tm * C * 4                   # f32 temporaries (x, centered, y)
                + tm * tn * 4)                     # f32 matmul result before cast

    while vmem_est(tile_m, tile_n) > budget and tile_m > 256:
        tile_m = _round_up(max(256, tile_m // 2), 8)
    while vmem_est(tile_m, tile_n) > budget and tile_n > 128:
        tile_n = max(128, tile_n // 2)

    vmem_limit = int(min(budget, max(16 * 1024 * 1024, 2 * vmem_est(tile_m, tile_n))))
    return tile_m, tile_n, vmem_limit


def prepare_prenorm_linear(gamma, beta, w, b, *, tile_n: int):
    """Fold the LayerNorm affine into the Linear weights; cast/pad once.

    Returns (w_folded_bf16 padded to a tile_n multiple, bias_folded_f32 (1, Dp)).
    Exact algebra:  (x_hat * gamma + beta) @ W + b == x_hat @ (gamma*W) + (beta@W + b).
    """
    C, D = w.shape
    Dp = _round_up(D, tile_n)
    wf = gamma.astype(jnp.float32)[:, None] * w.astype(jnp.float32)
    bf = beta.astype(jnp.float32) @ w.astype(jnp.float32) + b.astype(jnp.float32)
    w16 = wf.astype(jnp.bfloat16)
    b2 = bf.reshape(1, D)
    if Dp != D:
        w16 = jnp.pad(w16, ((0, 0), (0, Dp - D)))
        b2 = jnp.pad(b2, ((0, 0), (0, Dp - D)))
    return w16, b2


# ---------------------------------------------------------------------------
# Forward
# ---------------------------------------------------------------------------
@functools.partial(
    jax.jit,
    static_argnames=("out_dim", "tile_m", "tile_n", "vmem_limit", "out_dtype"))
def prenorm_forward(x, w16, b2, *, out_dim, tile_m, tile_n, vmem_limit,
                    out_dtype=None):
    """PreNorm forward: fn(LayerNorm(x)) with fn = Linear (weights pre-folded).

    x: (B, S, C); w16: (C, Dp) bf16 folded weight; b2: (1, Dp) f32 folded bias.
    Returns (B, S, out_dim).
    """
    B, S, C = x.shape
    M = B * S
    D = out_dim
    Dp = w16.shape[1]
    assert Dp % tile_n == 0
    out_dtype = x.dtype if out_dtype is None else out_dtype

    x2 = x.reshape(M, C)                      # contiguous reshape: free
    grid = (pl.cdiv(M, tile_m), Dp // tile_n) # partial edge blocks handled by Pallas

    cost = pl.CostEstimate(
        flops=2 * M * C * Dp + 6 * M * C,
        transcendentals=M,
        bytes_accessed=(M * C * x.dtype.itemsize + C * Dp * 2 + Dp * 4
                        + M * D * jnp.dtype(out_dtype).itemsize))

    out2 = pl.pallas_call(
        _prenorm_linear_kernel,
        out_shape=jax.ShapeDtypeStruct((M, D), out_dtype),
        grid_spec=pltpu.PrefetchScalarGridSpec(
            num_scalar_prefetch=0,
            grid=grid,
            in_specs=[
                # x rows: constant index across j -> not re-DMA'd per column tile
                pl.BlockSpec((tile_m, C), lambda i, j: (i, 0)),
                pl.BlockSpec((C, tile_n), lambda i, j: (0, j)),   # folded W tile
                pl.BlockSpec((1, tile_n), lambda i, j: (0, j)),   # folded bias tile
            ],
            out_specs=pl.BlockSpec((tile_m, tile_n), lambda i, j: (i, j)),
            scratch_shapes=[pltpu.VMEM((tile_m, C), jnp.bfloat16)],  # cached y
        ),
        compiler_params=pltpu.CompilerParams(
            dimension_semantics=("parallel", "arbitrary"),
            vmem_limit_bytes=vmem_limit),
        cost_estimate=cost,
    )(x2, w16, b2)

    return out2.reshape(B, S, D)


# ---------------------------------------------------------------------------
# References
# ---------------------------------------------------------------------------
def _module_reference(x, gamma, beta, w, b):
    """f32 end-to-end reference matching the PyTorch module semantics."""
    xf = x.astype(jnp.float32)
    mean = xf.mean(-1, keepdims=True)
    var = ((xf - mean) ** 2).mean(-1, keepdims=True)
    y = (xf - mean) * jax.lax.rsqrt(var + EPS) * gamma + beta
    return (y @ w + b).astype(x.dtype)


def _kernel_numerics_reference(x, gamma, beta, w, b):
    """Pure-JAX reference mimicking the kernel numerics (fold + bf16 MXU)."""
    xf = x.astype(jnp.float32)
    mean = xf.mean(-1, keepdims=True)
    var = ((xf - mean) ** 2).mean(-1, keepdims=True)
    yn = (xf - mean) * jax.lax.rsqrt(var + EPS)
    wf = (gamma[:, None] * w).astype(jnp.bfloat16)
    bf = beta @ w + b
    out = jnp.dot(yn.astype(jnp.bfloat16), wf,
                  preferred_element_type=jnp.float32) + bf
    return out.astype(x.dtype)


# ---------------------------------------------------------------------------
# Demo / correctness check
# ---------------------------------------------------------------------------
if __name__ == "__main__":
    key = jax.random.PRNGKey(0)
    k_x, k_g, k_b, k_w, k_bias = jax.random.split(key, 5)

    B, S, C = 2, 70, 128   # batch, seq, in_channels  (M=140 -> partial row block)
    D = 96                 # fn = Linear(C -> D)       (D<128 -> partial column block)

    x = jax.random.normal(k_x, (B, S, C), dtype=jnp.float32)
    # LayerNorm affine params (torch default is ones/zeros; perturb so the affine
    # path — folded into W/b — is actually exercised).
    gamma = 1.0 + 0.1 * jax.random.normal(k_g, (C,), dtype=jnp.float32)
    beta = 0.1 * jax.random.normal(k_b, (C,), dtype=jnp.float32)
    # fn = Linear(C, D); stored as (in, out), i.e. torch weight.T
    w = jax.random.normal(k_w, (C, D), dtype=jnp.float32) / jnp.sqrt(C)
    b = 0.1 * jax.random.normal(k_bias, (D,), dtype=jnp.float32)

    M = B * S
    tile_m, tile_n, vmem_limit = select_tiles(
        M, C, D, jnp.dtype(x.dtype).itemsize, jnp.dtype(x.dtype).itemsize)

    # One-time weight prep (NOT per forward call).
    w16, b2 = prepare_prenorm_linear(gamma, beta, w, b, tile_n=tile_n)
    w16, b2 = jax.block_until_ready((w16, b2))

    out = prenorm_forward(x, w16, b2, out_dim=D, tile_m=tile_m, tile_n=tile_n,
                          vmem_limit=vmem_limit)
    out = jax.block_until_ready(out)
    assert out.shape == (B, S, D)

    ref_kernel = _kernel_numerics_reference(x, gamma, beta, w, b)
    ref_module = _module_reference(x, gamma, beta, w, b)
    err_k = float(jnp.max(jnp.abs(out - ref_kernel)))
    err_m = float(jnp.max(jnp.abs(out - ref_module)))
    assert jnp.allclose(out, ref_kernel, atol=1e-2, rtol=1e-2), err_k
    assert jnp.allclose(out, ref_module, atol=5e-2, rtol=5e-2), err_m

    print("KERNEL_OK")
</pallas_src>

<mosaic_0001>
module attributes {stable_mosaic.version = 11 : i64} {
  func.func @_prenorm_linear_kernel(%arg0: i32, %arg1: i32, %arg2: memref<72x128xf32, #tpu.memory_space<vmem>>, %arg3: memref<128x128xbf16, #tpu.memory_space<vmem>>, %arg4: memref<1x128xf32, #tpu.memory_space<vmem>>, %arg5: memref<72x128xf32, #tpu.memory_space<vmem>>, %arg6: memref<72x128xbf16, #tpu.memory_space<vmem>>) attributes {dimension_semantics = [#tpu.dimension_semantics<parallel>, #tpu.dimension_semantics<arbitrary>], iteration_bounds = array<i64: 2, 1>, scalar_prefetch = 0 : i64, scratch_operands = 1 : i64, tpu.core_type = #tpu.core_type<tc>, window_params = [{transform_indices = @transform_0, window_bounds = array<i64: 72, 128>}, {transform_indices = @transform_1, window_bounds = array<i64: 128, 128>}, {transform_indices = @transform_2, window_bounds = array<i64: 1, 128>}, {transform_indices = @transform_3, window_bounds = array<i64: 72, 128>}]} {
    %c0_i32 = arith.constant 0 : i32
    %0 = arith.cmpi eq, %arg1, %c0_i32 : i32
    %1 = arith.extui %0 : i1 to i32
    %c0_i32_0 = arith.constant 0 : i32
    %2 = arith.cmpi ne, %1, %c0_i32_0 : i32
    scf.if %2 {
      %c0_8 = arith.constant 0 : index
      %c0_9 = arith.constant 0 : index
      %10 = vector.load %arg2[%c0_8, %c0_9] : memref<72x128xf32, #tpu.memory_space<vmem>>, vector<72x128xf32>
      %cst_10 = arith.constant dense<0.000000e+00> : vector<72xf32>
      %11 = vector.multi_reduction <add>, %10, %cst_10 [1] : vector<72x128xf32> to vector<72xf32>
      %12 = vector.shape_cast %11 : vector<72xf32> to vector<72x1xf32>
      %cst_11 = arith.constant 1.280000e+02 : f32
      %13 = vector.broadcast %cst_11 : f32 to vector<72x1xf32>
      %14 = arith.divf %12, %13 : vector<72x1xf32>
      %15 = vector.broadcast %14 : vector<72x1xf32> to vector<72x128xf32>
      %16 = arith.subf %10, %15 : vector<72x128xf32>
      %17 = arith.mulf %16, %16 : vector<72x128xf32>
      %cst_12 = arith.constant dense<0.000000e+00> : vector<72xf32>
      %18 = vector.multi_reduction <add>, %17, %cst_12 [1] : vector<72x128xf32> to vector<72xf32>
      %19 = vector.shape_cast %18 : vector<72xf32> to vector<72x1xf32>
      %cst_13 = arith.constant 1.280000e+02 : f32
      %20 = vector.broadcast %cst_13 : f32 to vector<72x1xf32>
      %21 = arith.divf %19, %20 : vector<72x1xf32>
      %cst_14 = arith.constant 9.99999974E-6 : f32
      %22 = vector.broadcast %cst_14 : f32 to vector<72x1xf32>
      %23 = arith.addf %21, %22 : vector<72x1xf32>
      %24 = math.rsqrt %23 : vector<72x1xf32>
      %25 = vector.broadcast %24 : vector<72x1xf32> to vector<72x128xf32>
      %26 = arith.mulf %16, %25 : vector<72x128xf32>
      %27 = arith.truncf %26 : vector<72x128xf32> to vector<72x128xbf16>
      %c0_15 = arith.constant 0 : index
      %c0_16 = arith.constant 0 : index
      %28 = vector.load %arg6[%c0_15, %c0_16] : memref<72x128xbf16, #tpu.memory_space<vmem>>, vector<72x128xbf16>
      tpu.vector_store %arg6[%c0_15, %c0_16], %27 {strides = array<i32>} : memref<72x128xbf16, #tpu.memory_space<vmem>>, vector<72x128xbf16>,
    } else {
    }
    %c0 = arith.constant 0 : index
    %c0_1 = arith.constant 0 : index
    %3 = vector.load %arg6[%c0, %c0_1] : memref<72x128xbf16, #tpu.memory_space<vmem>>, vector<72x128xbf16>
    %c0_2 = arith.constant 0 : index
    %c0_3 = arith.constant 0 : index
    %4 = vector.load %arg3[%c0_2, %c0_3] : memref<128x128xbf16, #tpu.memory_space<vmem>>, vector<128x128xbf16>
    %cst = arith.constant dense<0.000000e+00> : vector<72x128xf32>
    %5 = tpu.matmul %3, %4, %cst {dimension_numbers = #tpu.dot_dimension_numbers<[1], [0], [0], [1], [0, 0, 1, 1], [], []>} : vector<72x128xbf16>, vector<128x128xbf16>, vector<72x128xf32> -> vector<72x128xf32>
    %c0_4 = arith.constant 0 : index
    %c0_5 = arith.constant 0 : index
    %6 = vector.load %arg4[%c0_4, %c0_5] : memref<1x128xf32, #tpu.memory_space<vmem>>, vector<1x128xf32>
    %7 = vector.broadcast %6 : vector<1x128xf32> to vector<72x128xf32>
    %8 = arith.addf %5, %7 : vector<72x128xf32>
    %c0_6 = arith.constant 0 : index
    %c0_7 = arith.constant 0 : index
    %9 = vector.load %arg5[%c0_6, %c0_7] : memref<72x128xf32, #tpu.memory_space<vmem>>, vector<72x128xf32>
    tpu.vector_store %arg5[%c0_6, %c0_7], %8 {strides = array<i32>} : memref<72x128xf32, #tpu.memory_space<vmem>>, vector<72x128xf32>,
    return
  }
  func.func @transform_0(%arg0: i32, %arg1: i32) -> (i32, i32) {
    %c0_i32 = arith.constant 0 : i32
    %c0_i32_0 = arith.constant 0 : i32
    return %arg0, %c0_i32 : i32, i32
  }
  func.func @transform_1(%arg0: i32, %arg1: i32) -> (i32, i32) {
    %c0_i32 = arith.constant 0 : i32
    %c0_i32_0 = arith.constant 0 : i32
    return %c0_i32, %arg1 : i32, i32
  }
  func.func @transform_2(%arg0: i32, %arg1: i32) -> (i32, i32) {
    %c0_i32 = arith.constant 0 : i32
    %c0_i32_0 = arith.constant 0 : i32
    return %c0_i32, %arg1 : i32, i32
  }
  func.func @transform_3(%arg0: i32, %arg1: i32) -> (i32, i32) {
    %c0_i32 = arith.constant 0 : i32
    return %arg0, %arg1 : i32, i32
  }
}

</mosaic_0001>

<bundles_post_ra>
// kernel: prenorm_forward.1
= control target key start
LH: loop header
LB: loop body
LE: loop exit
PB: predicated region body
PF: predicated region fallthrough
CT: control target
= control target key end

     0   :  { %s910_s12 = smov 0   ;;  %s912_s13 = smov 0   ;;  %s1059_s0 = inlined_call_operand.vmem [shape: f32[140,128], index: 0, kind: input, shape index: {}]   ;;  %s1060_s1 = inlined_call_operand.vmem [shape: bf16[128,128], index: 1, kind: input, shape index: {}]   ;;  %s1061_s2 = inlined_call_operand.vmem [shape: f32[1,128], index: 2, kind: input, shape index: {}]   ;;  %s1062_s3 = inlined_call_operand.vmem [shape: f32[140,96], index: 3, kind: output, shape index: {}]  }
   0x1   :  { %s914_s14 = smov 0  }
   0x2 LB: > { %s25_s15 = sadd.s32 1, %s882_s13  ;;  %p682_p0 = scmp.ge.s32.totalorder %s886_s14, 1  ;;  %s886_s14 = sphi %s914_s14, %s13_s14   ;;  %s882_s13 = sphi %s912_s13, %s1064_s13   ;;  %s878_s12 = sphi %s910_s12, %s1063_s12  }
   0x3   : > { %p27_p1 = scmp.ge.s32.totalorder %s25_s15, 2  ;;  %p169_p2 = scmp.lt.s32.totalorder %s886_s14, 3 }
   0x5   : > { %s1066_s15 = smov (%p27_p1, %s25_s15), 0  ;;  %p170_p3 = pnand %p682_p0, %p169_p2 }
   0x6   : > { %s203_s16 = smul.u32 (!%p170_p3), 9, %s878_s12  ;;  %v833_v44 = vld [vmem:[%s1060_s1] sm:$0xff] (!%p170_p3)   ;;  %v888_v46 = vmov (!%p170_p3), 0.0   ;;  %v834_v47 = vld [vmem:[%s1060_s1 + $0x8] sm:$0xff] (!%p170_p3)   ;;  %v835_v48 = vld [vmem:[%s1060_s1 + $0x10] sm:$0xff] (!%p170_p3)   ;;  %vm889_vm0 = vmmov (!%p170_p3), 0  }
   0x7   : > { %173 = sbr.rel (%p170_p3) target bundleno = 572 (0x23c), region = 32  ;;  %755 = vmatprep.subr.bf16.mxu0 (!%p170_p3), %v888_v46  ;;  %791 = vmatprep.subr.bf16.mxu1 (!%p170_p3), %v888_v46  ;;  %v836_v49 = vld [vmem:[%s1060_s1 + $0x18] sm:$0xff] (!%p170_p3)   ;;  %v837_v50 = vld [vmem:[%s1060_s1 + $0x20] sm:$0xff] (!%p170_p3)   ;;  %v838_v51 = vld [vmem:[%s1060_s1 + $0x28] sm:$0xff] (!%p170_p3)  }
   0x8   : > { %p204_p4 = scmp.lt.s32.totalorder (!%p170_p3), %s203_s16, 17  ;;  %756 = vmatpush3.bf16.msra.mxu0 (!%p170_p3), %v833_v44  ;;  %799 = vmatpush3.bf16.msra.mxu1 (!%p170_p3), %v833_v44  ;;  %v839_v52 = vld [vmem:[%s1060_s1 + $0x30] sm:$0xff] (!%p170_p3)   ;;  %v840_v53 = vld [vmem:[%s1060_s1 + $0x38] sm:$0xff] (!%p170_p3)  }
   0x9   : > { %757 = vmatprep.subr.bf16.mxu0 (!%p170_p3), %v888_v46  ;;  %792 = vmatprep.subr.bf16.mxu1 (!%p170_p3), %v888_v46 }
   0xa   : > { %771 = vmatprep.mubr.msk.bf16.mxu0 (!%p170_p3), %vm889_vm0, %v888_v46  ;;  %783 = vmatprep.mubr.msk.bf16.mxu1 (!%p170_p3), %vm889_vm0, %v888_v46 }
   0xc   : > { %758 = vmatpush3.bf16.msra.mxu0 (!%p170_p3), %v834_v47  ;;  %800 = vmatpush3.bf16.msra.mxu1 (!%p170_p3), %v834_v47 }
   0xd   : > { %759 = vmatprep.subr.bf16.mxu0 (!%p170_p3), %v888_v46  ;;  %793 = vmatprep.subr.bf16.mxu1 (!%p170_p3), %v888_v46 }
   0xe   : > { %s1068_s16 = smov (!%p204_p4, %s203_s16), 17 }
   0xf   : > { %s683_s17 = sshll.u32 %s1068_s16, 3 }
  0x10   : > { %s207_s20 = scalar_lea.vmem %s1059_s0, %s683_s17  ;;  %760 = vmatpush3.bf16.msra.mxu0 %v835_v48  ;;  %801 = vmatpush3.bf16.msra.mxu1 %v835_v48  ;;  %s1039_s19 = scalar_lea.vmem %s1062_s3, %s683_s17 }
  0x11   : > { %v230_v0 = vld [vmem:[%s207_s20] sm:$0xff]  ;;  %v232_v1 = vld [vmem:[%s207_s20 + $0x10] sm:$0xff]  ;;  %v231_v2 = vld [vmem:[%s207_s20 + $0x8] sm:$0xff]  ;;  %761 = vmatprep.subr.bf16.mxu0 %v888_v46  ;;  %794 = vmatprep.subr.bf16.mxu1 %v888_v46 }
  0x12   : > { %239 = vadd.xlane.f32.xlu0 %v230_v0  ;;  %243 = vadd.xlane.f32.xlu1 %v232_v1  ;;  %v233_v3 = vld [vmem:[%s207_s20 + $0x18] sm:$0xff]  ;;  %v236_v4 = vld [vmem:[%s207_s20 + $0x30] sm:$0xff]  ;;  %v234_v6 = vld [vmem:[%s207_s20 + $0x20] sm:$0xff] }
  0x13   : > { %v237_v5 = vld [vmem:[%s207_s20 + $0x38] sm:$0xff]  ;;  %v235_v7 = vld [vmem:[%s207_s20 + $0x28] sm:$0xff]  ;;  %v238_v8 = vld [vmem:[%s207_s20 + $0x40] sm:$0xff] }
  0x14   : > { %762 = vmatpush3.bf16.msra.mxu0 %v836_v49  ;;  %802 = vmatpush3.bf16.msra.mxu1 %v836_v49 }
  0x15   : > { %763 = vmatprep.subr.bf16.mxu0 %v888_v46  ;;  %795 = vmatprep.subr.bf16.mxu1 %v888_v46 }
  0x16   : > { %241 = vadd.xlane.f32.xlu0 %v231_v2  ;;  %245 = vadd.xlane.f32.xlu1 %v233_v3 }
  0x18   : > { %764 = vmatpush3.bf16.msra.mxu0 %v837_v50  ;;  %803 = vmatpush3.bf16.msra.mxu1 %v837_v50 }
  0x19   : > { %765 = vmatprep.subr.bf16.mxu0 %v888_v46  ;;  %796 = vmatprep.subr.bf16.mxu1 %v888_v46 }
  0x1a   : > { %251 = vadd.xlane.f32.xlu0 %v236_v4  ;;  %253 = vadd.xlane.f32.xlu1 %v237_v5 }
  0x1c   : > { %766 = vmatpush3.bf16.msra.mxu0 %v838_v51  ;;  %804 = vmatpush3.bf16.msra.mxu1 %v838_v51 }
  0x1d   : > { %767 = vmatprep.subr.bf16.mxu0 %v888_v46  ;;  %797 = vmatprep.subr.bf16.mxu1 %v888_v46 }
  0x1e   : > { %247 = vadd.xlane.f32.xlu0 %v234_v6  ;;  %249 = vadd.xlane.f32.xlu1 %v235_v7 }
  0x20   : > { %768 = vmatpush3.bf16.msra.mxu0 %v839_v52  ;;  %805 = vmatpush3.bf16.msra.mxu1 %v839_v52 }
  0x21   : > { %769 = vmatprep.subr.bf16.mxu0 %v888_v46  ;;  %798 = vmatprep.subr.bf16.mxu1 %v888_v46 }
  0x22   : > { %255 = vadd.xlane.f32.xlu0 %v238_v8 }
  0x24   : > { %770 = vmatpush3.bf16.msra.mxu0 %v840_v53  ;;  %806 = vmatpush3.bf16.msra.mxu1 %v840_v53 }
  0x9f   : > { %v240_v9 = vpop.xlane.xlu0 %239  ;;  %v244_v10 = vpop.xlane.xlu1 %243 }
  0xa0   : > { %v258_v11 = vmul.f32 0.0078125, %v240_v9  ;;  %v260_v12 = vmul.f32 0.0078125, %v244_v10 }
  0xa2   : > { %v936_v13 = vsub.f32 %v230_v0, %v258_v11  ;;  %v938_v14 = vsub.f32 %v232_v1, %v260_v12 }
  0xa3   : > { %v242_v15 = vpop.xlane.xlu0 %241  ;;  %v246_v16 = vpop.xlane.xlu1 %245 }
  0xa4   : > { %v259_v17 = vmul.f32 0.0078125, %v242_v15  ;;  %v276_v18 = vmul.f32 %v936_v13, %v936_v13  ;;  %v261_v19 = vmul.f32 0.0078125, %v246_v16  ;;  %v278_v22 = vmul.f32 %v938_v14, %v938_v14 }
  0xa6   : > { %v942_v20 = vsub.f32 %v231_v2, %v259_v17  ;;  %285 = vadd.xlane.f32.xlu1 %v276_v18  ;;  %v944_v21 = vsub.f32 %v233_v3, %v261_v19 }
  0xa7   : > { %v252_v23 = vpop.xlane.xlu0 %251  ;;  %v254_v24 = vpop.xlane.xlu1 %253 }
  0xa8   : > { %v264_v25 = vmul.f32 0.0078125, %v252_v23  ;;  %v277_v26 = vmul.f32 %v942_v20, %v942_v20  ;;  %v265_v27 = vmul.f32 0.0078125, %v254_v24  ;;  %v279_v30 = vmul.f32 %v944_v21, %v944_v21 }
  0xaa   : > { %v950_v28 = vsub.f32 %v236_v4, %v264_v25  ;;  %289 = vadd.xlane.f32.xlu1 %v278_v22  ;;  %287 = vadd.xlane.f32.xlu0 %v277_v26  ;;  %v952_v29 = vsub.f32 %v237_v5, %v265_v27 }
  0xab   : > { %v248_v31 = vpop.xlane.xlu0 %247  ;;  %v250_v32 = vpop.xlane.xlu1 %249 }
  0xac   : > { %v262_v33 = vmul.f32 0.0078125, %v248_v31  ;;  %v282_v34 = vmul.f32 %v950_v28, %v950_v28  ;;  %v263_v35 = vmul.f32 0.0078125, %v250_v32  ;;  %v283_v38 = vmul.f32 %v952_v29, %v952_v29 }
  0xae   : > { %v958_v36 = vsub.f32 %v234_v6, %v262_v33  ;;  %291 = vadd.xlane.f32.xlu0 %v279_v30  ;;  %297 = vadd.xlane.f32.xlu1 %v282_v34  ;;  %v960_v37 = vsub.f32 %v235_v7, %v263_v35 }
  0xaf   : > { %v256_v39 = vpop.xlane.xlu0 %255 }
  0xb0   : > { %v266_v40 = vmul.f32 0.0078125, %v256_v39  ;;  %v280_v41 = vmul.f32 %v958_v36, %v958_v36  ;;  %v281_v43 = vmul.f32 %v960_v37, %v960_v37 }
  0xb2   : > { %v966_v42 = vsub.f32 %v238_v8, %v266_v40  ;;  %299 = vadd.xlane.f32.xlu0 %v283_v38  ;;  %293 = vadd.xlane.f32.xlu1 %v280_v41 }
  0xb4   : > { %v284_v45 = vmul.f32 %v966_v42, %v966_v42 }
  0xb6   : > { %295 = vadd.xlane.f32.xlu0 %v281_v43  ;;  %301 = vadd.xlane.f32.xlu1 %v284_v45 }
 0x133   : > { %v286_v54 = vpop.xlane.xlu1 %285 }
 0x134   : > { %v303_v55 = vmul.f32 0.0078125, %v286_v54 }
 0x136   : > { %v312_v56 = vadd.f32 1e-05, %v303_v55 }
 0x137   : > { %v290_v57 = vpop.xlane.xlu1 %289  ;;  %v288_v58 = vpop.xlane.xlu0 %287 }
 0x138   : > { %v305_v59 = vmul.f32 0.0078125, %v290_v57  ;;  %v304_v60 = vmul.f32 0.0078125, %v288_v58  ;;  %846 = vrsqrt.f32 %v312_v56 }
 0x13a   : > { %v313_v61 = vadd.f32 1e-05, %v304_v60  ;;  %v314_v62 = vadd.f32 1e-05, %v305_v59 }
 0x13b   : > { %v298_v63 = vpop.xlane.xlu1 %297  ;;  %v292_v0 = vpop.xlane.xlu0 %291 }
 0x13c   : > { %v309_v1 = vmul.f32 0.0078125, %v298_v63  ;;  %v306_v2 = vmul.f32 0.0078125, %v292_v0  ;;  %848 = vrsqrt.f32 %v313_v61 }
 0x13d   : > { %850 = vrsqrt.f32 %v314_v62 }
 0x13e   : > { %v315_v3 = vadd.f32 1e-05, %v306_v2  ;;  %v318_v4 = vadd.f32 1e-05, %v309_v1 }
 0x13f   : > { %v294_v5 = vpop.xlane.xlu1 %293  ;;  %v300_v6 = vpop.xlane.xlu0 %299 }
 0x140   : > { %v307_v7 = vmul.f32 0.0078125, %v294_v5  ;;  %v310_v8 = vmul.f32 0.0078125, %v300_v6  ;;  %852 = vrsqrt.f32 %v315_v3 }
 0x141   : > { %854 = vrsqrt.f32 %v318_v4 }
 0x142   : > { %v319_v9 = vadd.f32 1e-05, %v310_v8  ;;  %v316_v10 = vadd.f32 1e-05, %v307_v7  ;;  %v847_v17 = vpop.eup %846 }
 0x143   : > { %v302_v11 = vpop.xlane.xlu1 %301  ;;  %v296_v12 = vpop.xlane.xlu0 %295  ;;  %v330_v23 = vmul.f32 %v847_v17, %v936_v13 }
 0x144   : > { %v311_v15 = vmul.f32 0.0078125, %v302_v11  ;;  %v308_v16 = vmul.f32 0.0078125, %v296_v12  ;;  %856 = vrsqrt.f32 %v319_v9 }
 0x145   : > { %858 = vrsqrt.f32 %v316_v10 }
 0x146   : > { %v320_v18 = vadd.f32 1e-05, %v311_v15  ;;  %v317_v19 = vadd.f32 1e-05, %v308_v16  ;;  %v849_v22 = vpop.eup %848 }
 0x147   : > { %v331_v24 = vmul.f32 %v849_v22, %v942_v20  ;;  %v851_v25 = vpop.eup %850 }
 0x148   : > { %860 = vrsqrt.f32 %v320_v18  ;;  %v332_v30 = vmul.f32 %v851_v25, %v938_v14 }
 0x149   : > { %862 = vrsqrt.f32 %v317_v19  ;;  %v722_v26 = vpack.c.bf16 %v331_v24, %v330_v23 }
 0x14a   : > { %v853_v27 = vpop.eup %852 }
 0x14b   : > { %723 = vst [vmem:[#allocation2] sm:$0xff] %v722_v26   ;;  %v333_v31 = vmul.f32 %v853_v27, %v944_v21  ;;  %v855_v32 = vpop.eup %854 }
 0x14c   : > { %v336_v35 = vmul.f32 %v855_v32, %v950_v28 }
 0x14d   : > { %v727_v33 = vpack.c.bf16 %v333_v31, %v332_v30 }
 0x14e   : > { %v857_v34 = vpop.eup %856 }
 0x14f   : > { %739 = vst [vmem:[#allocation2 + $0x8] sm:$0xff] %v727_v33   ;;  %v337_v13 = vmul.f32 %v857_v34, %v952_v29  ;;  %v859_v38 = vpop.eup %858 }
 0x150   : > { %v334_v14 = vmul.f32 %v859_v38, %v958_v36 }
 0x151   : > { %v737_v39 = vpack.c.bf16 %v337_v13, %v336_v35 }
 0x152   : > { %v861_v20 = vpop.eup %860  ;;  %v841_v43 = vld [vmem:[#allocation2] sm:$0xff]  }
 0x153   : > { %v863_v40 = vpop.eup %862  ;;  %v338_v41 = vmul.f32 %v861_v20, %v966_v42  ;;  %741 = vst [vmem:[#allocation2 + $0x18] sm:$0xff] %v737_v39   ;;  %772 = vmatmul.mubr.bf16.vlgmr.msra.gmra.mrb[0].mxu0 %v841_v43  ;;  %v694_v42 = vld [vmem:[%s1061_s2] ss:$0 sm:$0xff] }
 0x154   : > { %v335_v21 = vmul.f32 %v863_v40, %v960_v37  ;;  %775 = vmatprep.mubr.msk.bf16.mxu0 %vm889_vm0, %v888_v46 }
 0x155   : > { %v718_v44 = vpack.c.bf16 %v338_v41, %v338_v41 }
 0x156   : > { %v732_v45 = vpack.c.bf16 %v335_v21, %v334_v14  ;;  %v842_v28 = vld [vmem:[#allocation2 + $0x8] sm:$0xff]  }
 0x157   : > { %384 = vst [vmem:[#allocation2 + $0x20] sm:$0xf] %v718_v44 }
 0x158   : > { %740 = vst [vmem:[#allocation2 + $0x10] sm:$0xff] %v732_v45  }
 0x15a   : > { %v843_v29 = vld [vmem:[#allocation2 + $0x18] sm:$0xff]  }
 0x15b   : > { %776 = vmatmul.mubr.bf16.gmra.mrb[4].mxu0 %v842_v28  ;;  %784 = vmatmul.mubr.bf16.vlgmr.msra.gmra.mrb[0].mxu1 %v843_v29 }
 0x15c   : > { %779 = vmatprep.mubr.msk.bf16.mxu0 %vm889_vm0, %v888_v46  ;;  %787 = vmatprep.mubr.msk.bf16.mxu1 %vm889_vm0, %v888_v46 }
 0x15e   : > { %v845_v37 = vld [vmem:[#allocation2 + $0x20] ss:$0 sps:$4 sm:$0xff]  }
 0x15f   : > { %v844_v36 = vld [vmem:[#allocation2 + $0x10] sm:$0xff]  }
 0x163   : > { %780 = vmatmul.mubr.bf16.gmra.mrb[8].mxu0 %v844_v36  ;;  %788 = vmatmul.mubr.bf16.gmra.mrb[4].mxu1 %v845_v37 }
 0x226   : > { %v527_v47 = vpop.f32.mrb[0].mxu0 }
 0x227   : > { %v528_v48 = vadd.f32 %v694_v42, %v527_v47  ;;  %v773_v46 = vpop.f32.mrb[1].mxu0 }
 0x228   : > { %v530_v49 = vpop.f32.mrb[2].mxu0 }
 0x229   : > { %565 = vst [vmem:[%s1039_s19] sm:$0xff] %v528_v48  ;;  %v531_v50 = vadd.f32 %v694_v42, %v530_v49  ;;  %v774_v51 = vpop.f32.mrb[3].mxu0 }
 0x22b   : > { %566 = vst [vmem:[%s1039_s19 + $0x8] sm:$0xff] %v531_v50 }
 0x22e   : > { %v535_v52 = vpop.f32.mrb[4].mxu0  ;;  %v551_v53 = vpop.f32.mrb[0].mxu1 }
 0x22f   : > { %v536_v54 = vadd.f32 %v694_v42, %v535_v52  ;;  %v552_v55 = vadd.f32 %v694_v42, %v551_v53  ;;  %v777_v56 = vpop.f32.mrb[5].mxu0  ;;  %v785_v57 = vpop.f32.mrb[1].mxu1 }
 0x230   : > { %v538_v58 = vpop.f32.mrb[6].mxu0  ;;  %v554_v59 = vpop.f32.mrb[2].mxu1 }
 0x231   : > { %567 = vst [vmem:[%s1039_s19 + $0x10] sm:$0xff] %v536_v54  ;;  %571 = vst [vmem:[%s1039_s19 + $0x30] sm:$0xff] %v552_v55  ;;  %v539_v60 = vadd.f32 %v694_v42, %v538_v58  ;;  %v555_v61 = vadd.f32 %v694_v42, %v554_v59  ;;  %v778_v62 = vpop.f32.mrb[7].mxu0  ;;  %v786_v63 = vpop.f32.mrb[3].mxu1 }
 0x233   : > { %568 = vst [vmem:[%s1039_s19 + $0x18] sm:$0xff] %v539_v60  ;;  %572 = vst [vmem:[%s1039_s19 + $0x38] sm:$0xff] %v555_v61 }
 0x236   : > { %v543_v0 = vpop.f32.mrb[8].mxu0  ;;  %v559_v1 = vpop.f32.mrb[4].mxu1 }
 0x237   : > { %v544_v2 = vadd.f32 %v694_v42, %v543_v0  ;;  %v560_v3 = vadd.f32 %v694_v42, %v559_v1  ;;  %v781_v4 = vpop.f32.mrb[9].mxu0  ;;  %v789_v5 = vpop.f32.mrb[5].mxu1 }
 0x238   : > { %v546_v6 = vpop.f32.mrb[10].mxu0  ;;  %v562_v7 = vpop.f32.mrb[6].mxu1 }
 0x239   : > { %569 = vst [vmem:[%s1039_s19 + $0x20] sm:$0xff] %v544_v2  ;;  %573 = vst [vmem:[%s1039_s19 + $0x40] sm:$0xff] %v560_v3  ;;  %v547_v8 = vadd.f32 %v694_v42, %v546_v6  ;;  %v782_v9 = vpop.f32.mrb[11].mxu0  ;;  %v790_v10 = vpop.f32.mrb[7].mxu1 }
 0x23b   : > { %570 = vst [vmem:[%s1039_s19 + $0x28] sm:$0xff] %v547_v8 }
 0x23c PF: > { %s13_s14 = sadd.s32 1, %s886_s14   ;;  %s1063_s12 = smov %s882_s13 }
 0x23d   : > { %p10_p5 = scmp.ge.s32.totalorder %s13_s14, 4   ;;  %s1064_s13 = smov %s1066_s15 }
 0x23f   :  { %12 = sbr.rel (!%p10_p5) target bundleno = 2 (0x2), region = 72 }

</bundles_post_ra>
